<compile_context>
chip_gen: v6e
topology: v6e:2x2x1
jax: 0.10.0
libtpu: 0.0.40
codegen_flags: <defaults>
</compile_context>

<pallas_src>
import functools

import jax
import jax.numpy as jnp
from jax.experimental import pallas as pl
from jax.experimental.pallas import tpu as pltpu

_VMEM_LIMIT = 32 * 1024 * 1024   # safe on v5e/v6e (128 MiB) and v7x (64 MiB phys)


def _row_tile(n, cap):
    """Whole axis if it fits, else `cap` (cap is a multiple of 8)."""
    return n if n <= cap else cap


def _const_spec(a, grid_ndim):
    """BlockSpec that loads the full (small) array every grid step."""
    nd = a.ndim
    if grid_ndim == 1:
        return pl.BlockSpec(a.shape, lambda i: (0,) * nd)
    return pl.BlockSpec(a.shape, lambda b, i: (0,) * nd)


# --------------------------------------------------------------------------
# STN: conv1(3->64) -> conv2(64->128) -> conv3(128->1024) (BN folded, ReLU)
# fused with max-over-points.  Output (B, 1, 1024) f32 accumulator.
# --------------------------------------------------------------------------
def _stn_conv_pool_kernel(x_ref, w1, b1, w2, b2, w3, b3, o_ref, *, tp, P):
    x = x_ref[0].astype(jnp.bfloat16)                                      # (tp, 3)
    h = jnp.maximum(jnp.dot(x, w1[...], preferred_element_type=jnp.float32) + b1[...], 0.0)
    h = jnp.maximum(jnp.dot(h.astype(jnp.bfloat16), w2[...],
                            preferred_element_type=jnp.float32) + b2[...], 0.0)
    h = jnp.maximum(jnp.dot(h.astype(jnp.bfloat16), w3[...],
                            preferred_element_type=jnp.float32) + b3[...], 0.0)
    if P % tp != 0:  # mask padded rows of a ragged last block
        r0 = pl.program_id(1) * tp
        rows = jax.lax.broadcasted_iota(jnp.int32, h.shape, 0) + r0
        h = jnp.where(rows < P, h, -jnp.inf)
    m = jnp.max(h, axis=0, keepdims=True)                                  # (1, 1024)

    @pl.when(pl.program_id(1) == 0)
    def _():
        o_ref[0] = m

    @pl.when(pl.program_id(1) != 0)
    def _():
        o_ref[0] = jnp.maximum(o_ref[0], m)


def stn_conv_pool(pos, p):
    B, P, _ = pos.shape
    tp = _row_tile(P, 512)
    arrays = [p["c1"]["w"], p["c1"]["b"], p["c2"]["w"], p["c2"]["b"],
              p["c3"]["w"], p["c3"]["b"]]
    out = pl.pallas_call(
        functools.partial(_stn_conv_pool_kernel, tp=tp, P=P),
        grid=(B, pl.cdiv(P, tp)),
        in_specs=[pl.BlockSpec((1, tp, 3), lambda b, i: (b, i, 0))]
                 + [_const_spec(a, 2) for a in arrays],
        out_specs=pl.BlockSpec((1, 1, 1024), lambda b, i: (b, 0, 0)),
        out_shape=jax.ShapeDtypeStruct((B, 1, 1024), jnp.float32),
        compiler_params=pltpu.CompilerParams(
            dimension_semantics=("parallel", "arbitrary"),
            vmem_limit_bytes=_VMEM_LIMIT),
    )(pos, *arrays)
    return out.reshape(B, 1024)


# --------------------------------------------------------------------------
# Generic fused dense chain for tiny-M heads (STN fc head, final MLP head).
# One pallas_call, all weights resident, optional log_softmax epilogue.
# --------------------------------------------------------------------------
def dense_chain(x, layers, epilogue=None):
    modes, arrays = [], []
    for L in layers:
        modes.append(L["mode"])
        arrays += [L["w"], L["b"]]
        if L["mode"] == "lin_relu_bn":
            arrays += [L["s"], L["t"]]
    modes = tuple(modes)
    M = x.shape[0]
    Nout = layers[-1]["w"].shape[1]

    def kernel(x_ref, *refs):
        o_ref = refs[-1]
        vals = refs[:-1]
        h = x_ref[...].astype(jnp.float32)
        idx = 0
        for mode in modes:
            w = vals[idx][...]
            b = vals[idx + 1][...]
            idx += 2
            y = jnp.dot(h.astype(jnp.bfloat16), w,
                        preferred_element_type=jnp.float32) + b
            if mode == "lin_relu":
                h = jnp.maximum(y, 0.0)
            elif mode == "lin_relu_bn":
                s = vals[idx][...]
                t = vals[idx + 1][...]
                idx += 2
                h = jnp.maximum(y, 0.0) * s + t
            else:
                h = y
        if epilogue == "log_softmax":
            z = h - jnp.max(h, axis=-1, keepdims=True)
            h = z - jnp.log(jnp.sum(jnp.exp(z), axis=-1, keepdims=True))
        o_ref[...] = h

    return pl.pallas_call(
        kernel, grid=(1,),
        in_specs=[_const_spec(x, 1)] + [_const_spec(a, 1) for a in arrays],
        out_specs=pl.BlockSpec((M, Nout), lambda i: (0, 0)),
        out_shape=jax.ShapeDtypeStruct((M, Nout), jnp.float32),
        compiler_params=pltpu.CompilerParams(
            dimension_semantics=("arbitrary",),
            vmem_limit_bytes=_VMEM_LIMIT),
    )(x, *arrays)


# --------------------------------------------------------------------------
# Fused (pos @ trans) + conv1 pre-MLP([3,16]) (Lin->ReLU->BN) -> g (bf16)
# --------------------------------------------------------------------------
def _bmm_pre_kernel(pos_ref, tr_ref, w, b, s, t, o_ref):
    pt = jnp.dot(pos_ref[0], tr_ref[0], preferred_element_type=jnp.float32)   # (tp, 3)
    y = jnp.dot(pt.astype(jnp.bfloat16), w[...],
                preferred_element_type=jnp.float32) + b[...]
    y = jnp.maximum(y, 0.0) * s[...] + t[...]
    o_ref[0] = y.astype(o_ref.dtype)


def bmm_pre(pos, trans, p):
    B, P, _ = pos.shape
    C = p["w"].shape[1]
    tp = _row_tile(P, 1024)
    arrays = [p["w"], p["b"], p["s"], p["t"]]
    return pl.pallas_call(
        _bmm_pre_kernel,
        grid=(B, pl.cdiv(P, tp)),
        in_specs=[pl.BlockSpec((1, tp, 3), lambda b, i: (b, i, 0)),
                  pl.BlockSpec((1, 3, 3), lambda b, i: (b, 0, 0))]
                 + [_const_spec(a, 2) for a in arrays],
        out_specs=pl.BlockSpec((1, tp, C), lambda b, i: (b, i, 0)),
        out_shape=jax.ShapeDtypeStruct((B, P, C), jnp.bfloat16),
        compiler_params=pltpu.CompilerParams(
            dimension_semantics=("parallel", "parallel"),
            vmem_limit_bytes=_VMEM_LIMIT),
    )(pos, trans, *arrays)


# --------------------------------------------------------------------------
# Fused kNN: Gram-matrix pairwise distances (bf16 MXU cross, f32 norms) +
# iterative top-k.  Only (B, P, k) int32 indices leave VMEM.  k < P required.
# --------------------------------------------------------------------------
def _knn_kernel(q_ref, g_ref, idx_ref, *, k, tp, P):
    q = q_ref[0]                                                  # (tp, C) bf16
    g = g_ref[0]                                                  # (P,  C) bf16
    q32 = q.astype(jnp.float32)
    g32 = g.astype(jnp.float32)
    qn = jnp.sum(q32 * q32, axis=-1, keepdims=True)               # (tp, 1)
    gn = jnp.sum(g32 * g32, axis=-1)[None, :]                     # (1, P)
    cross = jax.lax.dot_general(q, g, (((1,), (1,)), ((), ())),
                                preferred_element_type=jnp.float32)   # (tp, P)
    d = qn + gn - 2.0 * cross
    r0 = pl.program_id(1) * tp
    rows = jax.lax.broadcasted_iota(jnp.int32, (tp, P), 0) + r0
    cols = jax.lax.broadcasted_iota(jnp.int32, (tp, P), 1)
    colsf = cols.astype(jnp.float32)
    big = jnp.float32(3.0e38)
    d = jnp.where(rows == cols, big, d)                           # exclude self (loop=False)
    colk = jax.lax.broadcasted_iota(jnp.int32, (tp, k), 1)
    out = jnp.zeros((tp, k), jnp.int32)
    # TODO(synk): for large k/P a chunked partial top-k would cut the VPU/XLU
    # passes; the plain iterative scan is kept here for robustness.
    for j in range(k):
        m = jnp.min(d, axis=-1, keepdims=True)
        sel = jnp.min(jnp.where(d <= m, colsf, jnp.float32(P)),
                      axis=-1, keepdims=True)                     # smallest argmin
        out = jnp.where(colk == j, sel.astype(jnp.int32), out)
        d = jnp.where(colsf == sel, big, d)
    idx_ref[0] = out


def knn_indices(g, k):
    B, P, C = g.shape
    tp = P if P <= 128 else 128
    return pl.pallas_call(
        functools.partial(_knn_kernel, k=k, tp=tp, P=P),
        grid=(B, pl.cdiv(P, tp)),
        in_specs=[pl.BlockSpec((1, tp, C), lambda b, i: (b, i, 0)),
                  pl.BlockSpec((1, P, C), lambda b, i: (b, 0, 0))],
        out_specs=pl.BlockSpec((1, tp, k), lambda b, i: (b, i, 0)),
        out_shape=jax.ShapeDtypeStruct((B, P, k), jnp.int32),
        compiler_params=pltpu.CompilerParams(
            dimension_semantics=("parallel", "parallel"),
            vmem_limit_bytes=_VMEM_LIMIT),
    )(g, g)


# --------------------------------------------------------------------------
# Fused edge MLP + max-over-k aggregation.
#   first layer: concat([x_i, x_j - x_i]) @ W1 == x_i @ (W1_i - W1_d) + x_j @ W1_d
#   the x_i half is computed once per tile; per-slot work is one (tm,C)@(C,C1)
#   matmul + the remaining layers; per-edge activations never leave VMEM.
# --------------------------------------------------------------------------
def _edge_mlp_max_kernel(*refs, k, n_extra):
    gc_ref, gj_ref = refs[0], refs[1]
    w1c_ref, w1d_ref, b1_ref, s1_ref, t1_ref = refs[2:7]
    extra_refs = refs[7:7 + 4 * n_extra]
    o_ref = refs[7 + 4 * n_extra]

    w1d = w1d_ref[...]
    b1 = b1_ref[...]
    s1 = s1_ref[...]
    t1 = t1_ref[...]
    extras = [(extra_refs[4 * l][...], extra_refs[4 * l + 1][...],
               extra_refs[4 * l + 2][...], extra_refs[4 * l + 3][...])
              for l in range(n_extra)]

    # x_i half of the first layer: computed once (k-fold FLOP saving).
    a = jnp.dot(gc_ref[...], w1c_ref[...], preferred_element_type=jnp.float32) + b1

    acc = None
    for j in range(k):
        h = a + jnp.dot(gj_ref[j], w1d, preferred_element_type=jnp.float32)
        h = jnp.maximum(h, 0.0) * s1 + t1
        for (w, b, s, t) in extras:
            h = jnp.dot(h.astype(jnp.bfloat16), w,
                        preferred_element_type=jnp.float32) + b
            h = jnp.maximum(h, 0.0) * s + t
        acc = h if acc is None else jnp.maximum(acc, h)
    o_ref[...] = acc.astype(o_ref.dtype)


def edge_mlp_max(g2d, gj, nn_p):
    N, C = g2d.shape
    k = gj.shape[0]
    extras = nn_p["extras"]
    Cout = extras[-1]["w"].shape[1] if extras else nn_p["w1d"].shape[1]
    tm = _row_tile(N, 1024)
    arrays = [nn_p["w1c"], nn_p["w1d"], nn_p["b1"], nn_p["s1"], nn_p["t1"]]
    for e in extras:
        arrays += [e["w"], e["b"], e["s"], e["t"]]
    return pl.pallas_call(
        functools.partial(_edge_mlp_max_kernel, k=k, n_extra=len(extras)),
        grid=(pl.cdiv(N, tm),),
        in_specs=[pl.BlockSpec((tm, C), lambda i: (i, 0)),
                  pl.BlockSpec((k, tm, C), lambda i: (0, i, 0))]
                 + [_const_spec(a, 1) for a in arrays],
        out_specs=pl.BlockSpec((tm, Cout), lambda i: (i, 0)),
        out_shape=jax.ShapeDtypeStruct((N, Cout), jnp.bfloat16),
        compiler_params=pltpu.CompilerParams(
            dimension_semantics=("parallel",),
            vmem_limit_bytes=_VMEM_LIMIT),
    )(g2d, gj, *arrays)


# --------------------------------------------------------------------------
# Fused lin1 (two-input, concat avoided) + global max pool (equal-size clouds).
# --------------------------------------------------------------------------
def _lin1_pool_kernel(x1_ref, x2_ref, wa, wb, b, s, t, o_ref, *, tp, P):
    y = (jnp.dot(x1_ref[0], wa[...], preferred_element_type=jnp.float32)
         + jnp.dot(x2_ref[0], wb[...], preferred_element_type=jnp.float32)
         + b[...])
    y = jnp.maximum(y, 0.0) * s[...] + t[...]
    if P % tp != 0:
        r0 = pl.program_id(1) * tp
        rows = jax.lax.broadcasted_iota(jnp.int32, y.shape, 0) + r0
        y = jnp.where(rows < P, y, -jnp.inf)
    m = jnp.max(y, axis=0, keepdims=True)                             # (1, 1024)

    @pl.when(pl.program_id(1) == 0)
    def _():
        o_ref[0] = m

    @pl.when(pl.program_id(1) != 0)
    def _():
        o_ref[0] = jnp.maximum(o_ref[0], m)


def lin1_pool(x1, x2, p, B, P):
    C1, C2 = x1.shape[1], x2.shape[1]
    Nout = p["wa"].shape[1]
    tp = _row_tile(P, 512)
    arrays = [p["wa"], p["wb"], p["b"], p["s"], p["t"]]
    out = pl.pallas_call(
        functools.partial(_lin1_pool_kernel, tp=tp, P=P),
        grid=(B, pl.cdiv(P, tp)),
        in_specs=[pl.BlockSpec((1, tp, C1), lambda b, i: (b, i, 0)),
                  pl.BlockSpec((1, tp, C2), lambda b, i: (b, i, 0))]
                 + [_const_spec(a, 2) for a in arrays],
        out_specs=pl.BlockSpec((1, 1, Nout), lambda b, i: (b, 0, 0)),
        out_shape=jax.ShapeDtypeStruct((B, 1, Nout), jnp.float32),
        compiler_params=pltpu.CompilerParams(
            dimension_semantics=("parallel", "arbitrary"),
            vmem_limit_bytes=_VMEM_LIMIT),
    )(x1.reshape(B, P, C1), x2.reshape(B, P, C2), *arrays)
    return out.reshape(B, Nout)


# --------------------------------------------------------------------------
# Model pieces
# --------------------------------------------------------------------------
def edge_conv(g, nn_p, k, B, P):
    # TODO(synk): TemporalAutomatedGraphDynamicEdgeConv source was not provided;
    # this implements standard DynamicEdgeConv semantics (kNN on the pre-MLP
    # features, max aggregation of nn([x_i, x_j - x_i])); head_num / temporal
    # sequence-number weighting are not reproduced.
    N, C = g.shape
    nbr_local = knn_indices(g.reshape(B, P, C), k)                       # (B, P, k)
    offs = (jnp.arange(B, dtype=jnp.int32) * P)[:, None, None]
    nbr = (nbr_local + offs).reshape(N, k)                               # global idx
    # Slot-major neighbour gather at the minimal width C (bf16).
    # TODO(synk): could move into the edge kernel via a scalar-prefetch row
    # gather to avoid this (k*N, C) HBM tensor entirely.
    gj = jnp.take(g, nbr.T.reshape(-1), axis=0).reshape(k, N, C)
    out = edge_mlp_max(g, gj, nn_p)                                      # (N, Cout) bf16
    centers = jnp.repeat(jnp.arange(N, dtype=jnp.int32), k)
    edge_index = jnp.stack([nbr.reshape(-1), centers], axis=0)
    return out, edge_index


def net_forward(x_feats, pos, batch, params, *, num_frames, k, B, P):
    seq = x_feats[:, 0].astype(jnp.float32)
    seq = seq - jnp.min(seq)
    seq = seq / jnp.max(seq)

    pos3 = pos.reshape(B, P, 3)
    pooled = stn_conv_pool(pos3, params["stn"])                          # (B, 1024)
    trans = dense_chain(pooled, params["stn_head"]).reshape(B, 3, 3)     # iden folded in f3 bias
    g1 = bmm_pre(pos3, trans, params["conv1_pre"]).reshape(B * P, -1)    # (N, 16) bf16

    x1, ei1 = edge_conv(g1, params["conv1_nn"], k, B, P)                 # (N, 64)
    x2, ei2 = edge_conv(x1, params["conv2_nn"], k, B, P)                 # (N, 128)

    pooled2 = lin1_pool(x1, x2, params["lin1"], B, P)                    # (B, 1024)
    logp = dense_chain(pooled2, params["head"], epilogue="log_softmax")  # Dropout = identity (eval)

    useq = (num_frames - 1) * ((seq - jnp.min(seq)) / (jnp.max(seq) - jnp.min(seq))) + 1.0
    edges = jnp.stack([ei1, ei2], axis=0)                                # (2, 2, N*k)
    return logp, edges, useq


# --------------------------------------------------------------------------
# Deterministic parameter construction (inference-mode BN folding)
# --------------------------------------------------------------------------
def init_params(key, out_channels):
    it = iter(jax.random.split(key, 100))

    def lin(cin, cout):
        w = jax.random.normal(next(it), (cin, cout), jnp.float32) * (cin ** -0.5)
        b = 0.01 * jax.random.normal(next(it), (1, cout), jnp.float32)
        return w, b

    def bn(cout):
        gamma = 1.0 + 0.1 * jax.random.normal(next(it), (1, cout), jnp.float32)
        beta = 0.01 * jax.random.normal(next(it), (1, cout), jnp.float32)
        eps = 1e-5
        # Init-time running stats (mean=0, var=1).
        # TODO(synk): for trained running stats use s = gamma/sqrt(var+eps),
        # t = beta - gamma*mean/sqrt(var+eps).
        return gamma / jnp.sqrt(1.0 + eps), beta

    def bn_relu_block(cin, cout):      # Lin/Conv1d(k=1) -> BN -> ReLU (BN folded into W/b)
        w, b = lin(cin, cout)
        s, t = bn(cout)
        return {"mode": "lin_relu", "w": (w * s).astype(jnp.bfloat16), "b": b * s + t}

    def mlp_block(cin, cout):          # Lin -> ReLU -> BN   (the MLP([...]) helper)
        w, b = lin(cin, cout)
        s, t = bn(cout)
        return {"mode": "lin_relu_bn", "w": w.astype(jnp.bfloat16), "b": b, "s": s, "t": t}

    def plain(cin, cout):
        w, b = lin(cin, cout)
        return {"mode": "lin", "w": w.astype(jnp.bfloat16), "b": b}

    def edge_nn(cin, channels):
        # MLP([2*cin, *channels]); first-layer weight split at the concat
        # boundary so the x_i half runs once per point.
        w, b = lin(2 * cin, channels[0])
        s, t = bn(channels[0])
        p = {"w1c": (w[:cin] - w[cin:]).astype(jnp.bfloat16),
             "w1d": w[cin:].astype(jnp.bfloat16),
             "b1": b, "s1": s, "t1": t, "extras": []}
        prev = channels[0]
        for c in channels[1:]:
            w, b = lin(prev, c)
            s, t = bn(c)
            p["extras"].append({"w": w.astype(jnp.bfloat16), "b": b, "s": s, "t": t})
            prev = c
        return p

    f3 = plain(256, 9)
    f3["b"] = f3["b"] + jnp.eye(3, dtype=jnp.float32).reshape(1, 9)   # fold `+ iden`

    # lin1 = MLP([128 + 64, 1024]) split at the cat([x1, x2]) boundary (x1 first).
    w, b = lin(64 + 128, 1024)
    s, t = bn(1024)
    lin1 = {"wa": w[:64].astype(jnp.bfloat16), "wb": w[64:].astype(jnp.bfloat16),
            "b": b, "s": s, "t": t}

    return {
        "stn": {"c1": bn_relu_block(3, 64), "c2": bn_relu_block(64, 128),
                "c3": bn_relu_block(128, 1024)},
        "stn_head": [bn_relu_block(1024, 512), bn_relu_block(512, 256), f3],
        "conv1_pre": mlp_block(3, 16),
        "conv1_nn": edge_nn(16, [64, 64, 64]),
        "conv2_nn": edge_nn(64, [128]),
        "lin1": lin1,
        "head": [mlp_block(1024, 512), mlp_block(512, 256), plain(256, out_channels)],
    }


if __name__ == "__main__":
    B, P, NUM_FRAMES, K_NN, OUT = 2, 16, 4, 4, 5     # P = points per cloud, k < P
    N = B * P
    key = jax.random.PRNGKey(0)
    kp, kpos = jax.random.split(key, 2)
    params = init_params(kp, OUT)

    # data.x[:, 0] = per-point frame/sequence numbers; data.pos; data.batch
    frame_ids = jnp.tile(jnp.repeat(jnp.arange(NUM_FRAMES), P // NUM_FRAMES), B)
    x_feats = frame_ids.astype(jnp.float32)[:, None]             # (N, 1)
    pos = jax.random.normal(kpos, (N, 3), jnp.float32)            # (N, 3)
    batch = jnp.repeat(jnp.arange(B), P)                          # (N,)

    logp, edges, useq = net_forward(x_feats, pos, batch, params,
                                    num_frames=NUM_FRAMES, k=K_NN, B=B, P=P)
    jax.block_until_ready((logp, edges, useq))
    print("KERNEL_OK")
</pallas_src>

<mosaic_0001>
module attributes {stable_mosaic.version = 11 : i64} {
  func.func @_stn_conv_pool_kernel(%arg0: i32, %arg1: i32, %arg2: memref<1x16x3xf32, #tpu.memory_space<vmem>>, %arg3: memref<3x64xbf16, #tpu.memory_space<vmem>>, %arg4: memref<1x64xf32, #tpu.memory_space<vmem>>, %arg5: memref<64x128xbf16, #tpu.memory_space<vmem>>, %arg6: memref<1x128xf32, #tpu.memory_space<vmem>>, %arg7: memref<128x1024xbf16, #tpu.memory_space<vmem>>, %arg8: memref<1x1024xf32, #tpu.memory_space<vmem>>, %arg9: memref<1x1x1024xf32, #tpu.memory_space<vmem>>) attributes {dimension_semantics = [#tpu.dimension_semantics<parallel>, #tpu.dimension_semantics<arbitrary>], iteration_bounds = array<i64: 2, 1>, scalar_prefetch = 0 : i64, scratch_operands = 0 : i64, tpu.core_type = #tpu.core_type<tc>, window_params = [{transform_indices = @transform_0, window_bounds = array<i64: 1, 16, 3>}, {pipeline_mode = #tpu.pipeline_mode<synchronous>, transform_indices = @transform_1, window_bounds = array<i64: 3, 64>}, {pipeline_mode = #tpu.pipeline_mode<synchronous>, transform_indices = @transform_2, window_bounds = array<i64: 1, 64>}, {pipeline_mode = #tpu.pipeline_mode<synchronous>, transform_indices = @transform_3, window_bounds = array<i64: 64, 128>}, {pipeline_mode = #tpu.pipeline_mode<synchronous>, transform_indices = @transform_4, window_bounds = array<i64: 1, 128>}, {pipeline_mode = #tpu.pipeline_mode<synchronous>, transform_indices = @transform_5, window_bounds = array<i64: 128, 1024>}, {pipeline_mode = #tpu.pipeline_mode<synchronous>, transform_indices = @transform_6, window_bounds = array<i64: 1, 1024>}, {transform_indices = @transform_7, window_bounds = array<i64: 1, 1, 1024>}]} {
    %c0 = arith.constant 0 : index
    %c0_0 = arith.constant 0 : index
    %c0_1 = arith.constant 0 : index
    %0 = vector.load %arg2[%c0, %c0_0, %c0_1] : memref<1x16x3xf32, #tpu.memory_space<vmem>>, vector<1x16x3xf32>
    %1 = vector.shape_cast %0 : vector<1x16x3xf32> to vector<16x3xf32>
    %2 = arith.truncf %1 : vector<16x3xf32> to vector<16x3xbf16>
    %c0_2 = arith.constant 0 : index
    %c0_3 = arith.constant 0 : index
    %3 = vector.load %arg3[%c0_2, %c0_3] : memref<3x64xbf16, #tpu.memory_space<vmem>>, vector<3x64xbf16>
    %cst = arith.constant dense<0.000000e+00> : vector<16x64xf32>
    %4 = tpu.matmul %2, %3, %cst {dimension_numbers = #tpu.dot_dimension_numbers<[1], [0], [0], [1], [0, 0, 1, 1], [], []>} : vector<16x3xbf16>, vector<3x64xbf16>, vector<16x64xf32> -> vector<16x64xf32>
    %c0_4 = arith.constant 0 : index
    %c0_5 = arith.constant 0 : index
    %5 = vector.load %arg4[%c0_4, %c0_5] : memref<1x64xf32, #tpu.memory_space<vmem>>, vector<1x64xf32>
    %6 = vector.broadcast %5 : vector<1x64xf32> to vector<16x64xf32>
    %7 = arith.addf %4, %6 : vector<16x64xf32>
    %cst_6 = arith.constant 0.000000e+00 : f32
    %8 = vector.broadcast %cst_6 : f32 to vector<16x64xf32>
    %9 = arith.maximumf %7, %8 : vector<16x64xf32>
    %10 = arith.truncf %9 : vector<16x64xf32> to vector<16x64xbf16>
    %c0_7 = arith.constant 0 : index
    %c0_8 = arith.constant 0 : index
    %11 = vector.load %arg5[%c0_7, %c0_8] : memref<64x128xbf16, #tpu.memory_space<vmem>>, vector<64x128xbf16>
    %cst_9 = arith.constant dense<0.000000e+00> : vector<16x128xf32>
    %12 = tpu.matmul %10, %11, %cst_9 {dimension_numbers = #tpu.dot_dimension_numbers<[1], [0], [0], [1], [0, 0, 1, 1], [], []>} : vector<16x64xbf16>, vector<64x128xbf16>, vector<16x128xf32> -> vector<16x128xf32>
    %c0_10 = arith.constant 0 : index
    %c0_11 = arith.constant 0 : index
    %13 = vector.load %arg6[%c0_10, %c0_11] : memref<1x128xf32, #tpu.memory_space<vmem>>, vector<1x128xf32>
    %14 = vector.broadcast %13 : vector<1x128xf32> to vector<16x128xf32>
    %15 = arith.addf %12, %14 : vector<16x128xf32>
    %cst_12 = arith.constant 0.000000e+00 : f32
    %16 = vector.broadcast %cst_12 : f32 to vector<16x128xf32>
    %17 = arith.maximumf %15, %16 : vector<16x128xf32>
    %18 = arith.truncf %17 : vector<16x128xf32> to vector<16x128xbf16>
    %c0_13 = arith.constant 0 : index
    %c0_14 = arith.constant 0 : index
    %19 = vector.load %arg7[%c0_13, %c0_14] : memref<128x1024xbf16, #tpu.memory_space<vmem>>, vector<128x1024xbf16>
    %cst_15 = arith.constant dense<0.000000e+00> : vector<16x1024xf32>
    %20 = tpu.matmul %18, %19, %cst_15 {dimension_numbers = #tpu.dot_dimension_numbers<[1], [0], [0], [1], [0, 0, 1, 1], [], []>} : vector<16x128xbf16>, vector<128x1024xbf16>, vector<16x1024xf32> -> vector<16x1024xf32>
    %c0_16 = arith.constant 0 : index
    %c0_17 = arith.constant 0 : index
    %21 = vector.load %arg8[%c0_16, %c0_17] : memref<1x1024xf32, #tpu.memory_space<vmem>>, vector<1x1024xf32>
    %22 = vector.broadcast %21 : vector<1x1024xf32> to vector<16x1024xf32>
    %23 = arith.addf %20, %22 : vector<16x1024xf32>
    %cst_18 = arith.constant 0.000000e+00 : f32
    %24 = vector.broadcast %cst_18 : f32 to vector<16x1024xf32>
    %25 = arith.maximumf %23, %24 : vector<16x1024xf32>
    %cst_19 = arith.constant dense<0xFF800000> : vector<1024xf32>
    %26 = vector.multi_reduction <maximumf>, %25, %cst_19 [0] : vector<16x1024xf32> to vector<1024xf32>
    %27 = vector.shape_cast %26 : vector<1024xf32> to vector<1x1024xf32>
    %c0_i32 = arith.constant 0 : i32
    %28 = arith.cmpi eq, %arg1, %c0_i32 : i32
    %29 = arith.extui %28 : i1 to i32
    %c0_i32_20 = arith.constant 0 : i32
    %30 = arith.cmpi ne, %29, %c0_i32_20 : i32
    scf.if %30 {
      %c0_23 = arith.constant 0 : index
      %c0_24 = arith.constant 0 : index
      %c0_25 = arith.constant 0 : index
      %34 = vector.load %arg9[%c0_23, %c0_24, %c0_25] : memref<1x1x1024xf32, #tpu.memory_space<vmem>>, vector<1x1x1024xf32>
      %35 = vector.shape_cast %34 : vector<1x1x1024xf32> to vector<1x1024xf32>
      %36 = vector.shape_cast %27 : vector<1x1024xf32> to vector<1x1x1024xf32>
      tpu.vector_store %arg9[%c0_23, %c0_24, %c0_25], %36 {strides = array<i32>} : memref<1x1x1024xf32, #tpu.memory_space<vmem>>, vector<1x1x1024xf32>,
    } else {
    }
    %c0_i32_21 = arith.constant 0 : i32
    %31 = arith.cmpi ne, %arg1, %c0_i32_21 : i32
    %32 = arith.extui %31 : i1 to i32
    %c0_i32_22 = arith.constant 0 : i32
    %33 = arith.cmpi ne, %32, %c0_i32_22 : i32
    scf.if %33 {
      %c0_23 = arith.constant 0 : index
      %c0_24 = arith.constant 0 : index
      %c0_25 = arith.constant 0 : index
      %34 = vector.load %arg9[%c0_23, %c0_24, %c0_25] : memref<1x1x1024xf32, #tpu.memory_space<vmem>>, vector<1x1x1024xf32>
      %35 = vector.shape_cast %34 : vector<1x1x1024xf32> to vector<1x1024xf32>
      %36 = arith.maximumf %35, %27 : vector<1x1024xf32>
      %c0_26 = arith.constant 0 : index
      %c0_27 = arith.constant 0 : index
      %c0_28 = arith.constant 0 : index
      %37 = vector.load %arg9[%c0_26, %c0_27, %c0_28] : memref<1x1x1024xf32, #tpu.memory_space<vmem>>, vector<1x1x1024xf32>
      %38 = vector.shape_cast %37 : vector<1x1x1024xf32> to vector<1x1024xf32>
      %39 = vector.shape_cast %36 : vector<1x1024xf32> to vector<1x1x1024xf32>
      tpu.vector_store %arg9[%c0_26, %c0_27, %c0_28], %39 {strides = array<i32>} : memref<1x1x1024xf32, #tpu.memory_space<vmem>>, vector<1x1x1024xf32>,
    } else {
    }
    return
  }
  func.func @transform_0(%arg0: i32, %arg1: i32) -> (i32, i32, i32) {
    %c0_i32 = arith.constant 0 : i32
    %c0_i32_0 = arith.constant 0 : i32
    return %arg0, %arg1, %c0_i32 : i32, i32, i32
  }
  func.func @transform_1(%arg0: i32, %arg1: i32) -> (i32, i32) {
    %c0_i32 = arith.constant 0 : i32
    %c0_i32_0 = arith.constant 0 : i32
    %c0_i32_1 = arith.constant 0 : i32
    return %c0_i32, %c0_i32_0 : i32, i32
  }
  func.func @transform_2(%arg0: i32, %arg1: i32) -> (i32, i32) {
    %c0_i32 = arith.constant 0 : i32
    %c0_i32_0 = arith.constant 0 : i32
    %c0_i32_1 = arith.constant 0 : i32
    return %c0_i32, %c0_i32_0 : i32, i32
  }
  func.func @transform_3(%arg0: i32, %arg1: i32) -> (i32, i32) {
    %c0_i32 = arith.constant 0 : i32
    %c0_i32_0 = arith.constant 0 : i32
    %c0_i32_1 = arith.constant 0 : i32
    return %c0_i32, %c0_i32_0 : i32, i32
  }
  func.func @transform_4(%arg0: i32, %arg1: i32) -> (i32, i32) {
    %c0_i32 = arith.constant 0 : i32
    %c0_i32_0 = arith.constant 0 : i32
    %c0_i32_1 = arith.constant 0 : i32
    return %c0_i32, %c0_i32_0 : i32, i32
  }
  func.func @transform_5(%arg0: i32, %arg1: i32) -> (i32, i32) {
    %c0_i32 = arith.constant 0 : i32
    %c0_i32_0 = arith.constant 0 : i32
    %c0_i32_1 = arith.constant 0 : i32
    return %c0_i32, %c0_i32_0 : i32, i32
  }
  func.func @transform_6(%arg0: i32, %arg1: i32) -> (i32, i32) {
    %c0_i32 = arith.constant 0 : i32
    %c0_i32_0 = arith.constant 0 : i32
    %c0_i32_1 = arith.constant 0 : i32
    return %c0_i32, %c0_i32_0 : i32, i32
  }
  func.func @transform_7(%arg0: i32, %arg1: i32) -> (i32, i32, i32) {
    %c0_i32 = arith.constant 0 : i32
    %c0_i32_0 = arith.constant 0 : i32
    %c0_i32_1 = arith.constant 0 : i32
    return %arg0, %c0_i32, %c0_i32_0 : i32, i32, i32
  }
}

</mosaic_0001>

<bundles_post_ra>
// kernel: tpu_custom_call.1
= control target key start
LH: loop header
LB: loop body
LE: loop exit
PB: predicated region body
PF: predicated region fallthrough
CT: control target
= control target key end

     0   :  { %12 = vsyncpa [#allocation3], 0  ;;  %s1881_s0 = inlined_call_operand.vmem [shape: f32[2,16,3], index: 0, kind: input, shape index: {}]   ;;  %s1882_s1 = inlined_call_operand.vmem [shape: bf16[3,64], index: 1, kind: input, shape index: {}]   ;;  %s1883_s2 = inlined_call_operand.vmem [shape: f32[1,64], index: 2, kind: input, shape index: {}]   ;;  %s1884_s3 = inlined_call_operand.vmem [shape: bf16[64,128], index: 3, kind: input, shape index: {}]   ;;  %s1885_s4 = inlined_call_operand.vmem [shape: f32[1,128], index: 4, kind: input, shape index: {}]   ;;  %s1886_s5 = inlined_call_operand.hbm [shape: bf16[128,1024], index: 5, kind: input, shape index: {}]   ;;  %s1887_s6 = inlined_call_operand.vmem [shape: f32[1,1024], index: 6, kind: input, shape index: {}]   ;;  %s1888_s7 = inlined_call_operand.hbm [shape: f32[2,1,1024], index: 7, kind: output, shape index: {}]  }
   0x1   :  { %13 = vsyncpa [#allocation4], 0 }
   0x2   :  { %15 = vsyncpa [#allocation4 + $0x1], 0  ;;  %s1720_s24 = smov 0   ;;  %s1722_s25 = smov 0  }
   0x3   :  { %s1724_s26 = smov 0   ;;  %s1726_s27 = smov 0  }
   0x4   :  { %s1728_s28 = smov 0   ;;  %s1730_s29 = smov 0  }
   0x5 LB: > { %s1372_s30 = sadd.s32 4294967295, %s1669_s29   ;;  %s1373_s8 = sadd.s32 4294967294, %s1669_s29   ;;  %s1669_s29 = sphi %s1730_s29, %s21_s29   ;;  %s1665_s28 = sphi %s1728_s28, %s1897_s28   ;;  %s1661_s27 = sphi %s1726_s27, %s1896_s27   ;;  %s1657_s26 = sphi %s1724_s26, %s1895_s26   ;;  %s1653_s25 = sphi %s1722_s25, %s1894_s25   ;;  %s1649_s24 = sphi %s1720_s24, %s1893_s24  }
   0x6   : > { %s33_s9 = sadd.s32 1, %s1665_s28  ;;  %s194_s10 = sadd.s32 1, %s1657_s26 }
   0x7   : > { %p35_p0 = scmp.ge.s32.totalorder %s33_s9, 2  ;;  %p204_p1 = scmp.ne.s32.totalorder %s1657_s26, %s1653_s25 }
   0x8   : > { %p205_p2 = scmp.eq.s32.totalorder %s1372_s30, 1  ;;  %p210_p3 = scmp.ne.s32.totalorder %s1653_s25, %s1649_s24 }
   0x9   : > { %s1899_s9 = smov (%p35_p0, %s33_s9), 0  ;;  %p211_p5 = scmp.eq.s32.totalorder %s1373_s8, 1 }
   0xa   : > { %p1760_p4 = por %p205_p2, %p204_p1  ;;  %s191_s12 = ssub.s32 %s1665_s28, %s1899_s9 }
   0xb   : > { %p1374_p6 = scmp.ge.s32.totalorder %s1669_s29, 1  ;;  %p192_p7 = scmp.eq.s32.totalorder %s191_s12, 0 }
   0xc   : > { %p1767_p8 = por %p211_p5, %p210_p3  ;;  %p218_p9 = scmp.lt.s32.totalorder %s1669_s29, 3 }
   0xd   : > { %s1773_s14 = scalar_select %p192_p7, %s1657_s26, %s194_s10  }
   0xe   : > { %p1775_p10 = pnand %p1374_p6, %p218_p9  ;;  %p1779_p11 = scmp.eq.s32.totalorder %s1372_s30, 0 }
   0xf   : > { %s1671_s17 = smov [#allocation2]  }
  0x10   : > { %p1492_p12 = pneg %p1775_p10  ;;  %s242_s18 = sshll.u32 %s1671_s17, 4  ;;  %s243_s18 = int_to_ptr.vmem [resolvable:$true] %s242_s18 }
  0x11   : > { %s1574_s19 = scalar_lea.vmem %s243_s18, 8192  ;;  %p1582_p5 = scmp.lt.s32.totalorder %s243_s18, %s243_s18 }
  0x12   : > { %p1493_p13 = pnand %p1779_p11, %p1492_p12  ;;  %p1575_p1 = scmp.ne.s32.totalorder %s243_s18, %s1574_s19 }
  0x13   : > { %p1583_p6 = scmp.lt.s32.totalorder %s1574_s19, %s1574_s19 }
  0x14   : > { %p1565_p0 = pneg %p1493_p13 }
  0x15   : > { %p1584_p7 = por %p1583_p6, %p1582_p5 }
  0x16   : > { %p1577_p2 = pnand %p1575_p1, %p1565_p0 }
  0x18   : > { %p1578_p3 = pneg %p1577_p2 }
  0x1a   : > { %p1585_p9 = pnand %p1584_p7, %p1578_p3 }
  0x1c   : > { %1588 = shalt.err (!%p1585_p9)
}
  0x1d   : > { %s1672_s20 = smov 512   ;;  %s1673_s21 = smov 32  }
  0x1e   : > { %1495 = dma.hbm_to_vmem [thread:$0]  (!%p1493_p13), %s1886_s5, 8192, %s243_s18, [#allocation3], %s1672_s20, %s1672_s20, %s1673_s21  }
  0x1f   : > { %274 = sbr.rel (%p1775_p10) target bundleno = 724 (0x2d4), region = 48 }
  0x24   : > { %1640 = dma.done.wait (%p1779_p11), [#allocation3], 8192  }
  0x25   : > { %1642 = vsyncadd (%p1779_p11), [#allocation3], 4294959104  ;;  %vm336_vm0 = vcmask 1040384   ;;  %v1674_v0 = vmov 0.0   ;;  %p311_p12 = scmp.lt.s32.totalorder %s1661_s27, 1  ;;  %vm337_vm1 = vcmask 1041408  }
  0x26   : > { %1468 = vmatprep.subr.bf16.mxu0 %v1674_v0  ;;  %1474 = vmatprep.subr.bf16.mxu1 %v1674_v0  ;;  %v1675_v1 = vmov 65535   ;;  %vm1676_vm2 = vmmov 0   ;;  %v324_v4 = vld [vmem:[%s1882_s1] sm:$0x3]  ;;  %v1559_v8 = vld [vmem:[%s1884_s3 + $0x18] sm:$0xff]   ;;  %vm332_vm3 = vcmask 23552  }
  0x27   : > { %v338_v2 = vsel %vm336_vm0, 4294967295, %v1675_v1  ;;  %1470 = vmatprep.mubr.msk.bf16.mxu0 %vm1676_vm2, %v1674_v0  ;;  %1482 = vmatprep.mubr.msk.bf16.mxu1 %vm1676_vm2, %v1674_v0  ;;  %s312_s30 = scalar_select %p311_p12, %s1661_s27, 1  ;;  %v1560_v10 = vld [vmem:[%s1884_s3 + $0x10] sm:$0xff]   ;;  %v1561_v11 = vld [vmem:[%s1884_s3 + $0x8] sm:$0xff]   ;;  %v1562_v12 = vld [vmem:[%s1884_s3] sm:$0xff]   ;;  %vm426_vm4 = vcmask 523264  }
  0x28   : > { %v339_v3 = vsel %vm337_vm1, %v338_v2, 0  ;;  %1475 = vmatpush3.bf16.msra.mxu1 %v1559_v8  ;;  %v530_v13 = vld [vmem:[#allocation2 + $0x1c0] sm:$0xff]  ;;  %v531_v15 = vld [vmem:[#allocation2 + $0x1c8] sm:$0xff]  ;;  %s307_s19 = sand.u32 1, %s1653_s25   ;;  %s1460_s21 = sshll.u32 %s1661_s27, 7 }
  0x29   : > { %s1459_s8 = sshll.u32 %s312_s30, 4  ;;  %v341_v7 = vand.u32 %v339_v3, %v324_v4  ;;  %1476 = vmatprep.subr.bf16.mxu1 %v1674_v0  ;;  %v534_v14 = vld [vmem:[#allocation2 + $0x1e0] sm:$0xff]  ;;  %v535_v18 = vld [vmem:[#allocation2 + $0x1e8] sm:$0xff]  ;;  %s1379_s20 = sshll.u32 %s307_s19, 3 }
  0x2a   : > { %s318_s15 = scalar_lea.vmem %s1881_s0, %s1459_s8  ;;  %v1446_v16 = vcombine.low %v530_v13, %v534_v14  ;;  %v1447_v17 = vcombine.high %v530_v13, %v534_v14  ;;  %v522_v19 = vld [vmem:[#allocation2 + $0x180] sm:$0xff]  ;;  %v1448_v21 = vcombine.low %v531_v15, %v535_v18  ;;  %v1449_v22 = vcombine.high %v531_v15, %v535_v18  ;;  %v523_v48 = vld [vmem:[#allocation2 + $0x188] sm:$0xff]  ;;  %s309_s22 = scalar_lea.vmem [#allocation5], %s1379_s20 }
  0x2b   : > { %v321_v5 = vld [vmem:[%s318_s15] sm:$0xff]  ;;  %v322_v6 = vld [vmem:[%s318_s15 + $0x8] sm:$0xff]  ;;  %1469 = vmatpush3.bf16.msra.mxu0 %v341_v7  ;;  %s1287_s23 = sshll.u32 %s309_s22, 4  ;;  %s1285_s10 = scalar_lea.hbm %s1888_s7, %s1460_s21  ;;  %s1288_s23 = int_to_ptr.vmem [resolvable:$true] %s1287_s23 }
  0x2c   : > { %v323_v9 = vpack.c.bf16 %v322_v6, %v321_v5  ;;  %1477 = vmatpush3.bf16.msra.mxu1 %v1560_v10  ;;  %v526_v20 = vld [vmem:[#allocation2 + $0x1a0] sm:$0xff]  ;;  %900 = vmatprep.subr.bf16.mxu0 %v1447_v17  ;;  %v527_v49 = vld [vmem:[#allocation2 + $0x1a8] sm:$0xff]  ;;  %s1273_s12 = scalar_lea.sflag [#allocation4], %s307_s19  ;;  %s1589_s15 = scalar_lea.vmem %s1288_s23, 128 }
  0x2d   : > { %1478 = vmatprep.subr.bf16.mxu1 %v1674_v0  ;;  %v1439_v23 = vcombine.high %v522_v19, %v526_v20  ;;  %v1438_v24 = vcombine.low %v522_v19, %v526_v20  ;;  %v514_v25 = vld [vmem:[#allocation2 + $0x140] sm:$0xff]  ;;  %v1441_v53 = vcombine.high %v523_v48, %v527_v49  ;;  %v515_v54 = vld [vmem:[#allocation2 + $0x148] sm:$0xff]  ;;  %v1440_v56 = vcombine.low %v523_v48, %v527_v49  ;;  %v516_v48 = vld [vmem:[#allocation2 + $0x150] sm:$0xff]  ;;  %p1590_p10 = scmp.ne.s32.totalorder %s1288_s23, %s1589_s15  ;;  %s1679_s16 = smov [#allocation5]  }
  0x2e   : > { %1471 = vmatmul.mubr.msk.bf16.vlgmr.msra.gmra.mxu0 %vm332_vm3, %v323_v9  ;;  %v518_v26 = vld [vmem:[#allocation2 + $0x160] sm:$0xff]  ;;  %v519_v55 = vld [vmem:[#allocation2 + $0x168] sm:$0xff]  ;;  %v520_v49 = vld [vmem:[#allocation2 + $0x170] sm:$0xff]  ;;  %s1593_s17 = sshll.u32 %s1679_s16, 4  ;;  %s1594_s17 = int_to_ptr.vmem [resolvable:$false] %s1593_s17 }
  0x2f   : > { %901 = vmatpush1.bf16.msra.mxu0 %v1446_v16  ;;  %v1431_v27 = vcombine.high %v514_v25, %v518_v26  ;;  %v1430_v28 = vcombine.low %v514_v25, %v518_v26  ;;  %v506_v29 = vld [vmem:[#allocation2 + $0x100] sm:$0xff]  ;;  %v1433_v57 = vcombine.high %v515_v54, %v519_v55  ;;  %v507_v58 = vld [vmem:[#allocation2 + $0x108] sm:$0xff]  ;;  %v1432_v60 = vcombine.low %v515_v54, %v519_v55  ;;  %v533_v25 = vld [vmem:[#allocation2 + $0x1d8] sm:$0xff]  ;;  %p1591_p11 = pnand %p1590_p10, %p1760_p4  ;;  %s1595_s27 = scalar_lea.vmem %s1594_s17, 256 }
  0x30   : > { %1479 = vmatpush3.bf16.msra.mxu1 %v1561_v11  ;;  %902 = vmatprep.subr.bf16.mxu0 %v1439_v23  ;;  %v510_v30 = vld [vmem:[#allocation2 + $0x120] sm:$0xff]  ;;  %v511_v59 = vld [vmem:[#allocation2 + $0x128] sm:$0xff]  ;;  %v532_v23 = vld [vmem:[#allocation2 + $0x1d0] sm:$0xff]  ;;  %v1435_v54 = vcombine.high %v516_v48, %v520_v49  ;;  %p1596_p0 = scmp.lt.s32.totalorder %s1288_s23, %s1594_s17  ;;  %p1597_p1 = scmp.lt.s32.totalorder %s1595_s27, %s1589_s15 }
  0x31   : > { %1480 = vmatprep.subr.bf16.mxu1 %v1674_v0  ;;  %v1423_v31 = vcombine.high %v506_v29, %v510_v30  ;;  %v1422_v32 = vcombine.low %v506_v29, %v510_v30  ;;  %v498_v33 = vld [vmem:[#allocation2 + $0xc0] sm:$0xff]  ;;  %v1425_v61 = vcombine.high %v507_v58, %v511_v59  ;;  %v499_v62 = vld [vmem:[#allocation2 + $0xc8] sm:$0xff]  ;;  %v1424_v0 = vcombine.low %v507_v58, %v511_v59  ;;  %v509_v58 = vld [vmem:[#allocation2 + $0x118] sm:$0xff]  ;;  %p1592_p13 = pneg %p1591_p11 }
  0x32   : > { %v502_v34 = vld [vmem:[#allocation2 + $0xe0] sm:$0xff]  ;;  %v503_v63 = vld [vmem:[#allocation2 + $0xe8] sm:$0xff]  ;;  %v513_v59 = vld [vmem:[#allocation2 + $0x138] sm:$0xff]  ;;  %p1598_p2 = por %p1597_p1, %p1596_p0 }
  0x33   : > { %903 = vmatpush1.bf16.msra.mxu0 %v1438_v24  ;;  %v1415_v35 = vcombine.high %v498_v33, %v502_v34  ;;  %v1414_v36 = vcombine.low %v498_v33, %v502_v34  ;;  %v490_v37 = vld [vmem:[#allocation2 + $0x80] sm:$0xff]  ;;  %v1417_v1 = vcombine.high %v499_v62, %v503_v63  ;;  %v491_v2 = vld [vmem:[#allocation2 + $0x88] sm:$0xff]  ;;  %v1416_v4 = vcombine.low %v499_v62, %v503_v63  ;;  %v536_v24 = vld [vmem:[#allocation2 + $0x1f0] sm:$0xff] }
  0x34   : > { %1481 = vmatpush3.bf16.msra.mxu1 %v1562_v12  ;;  %904 = vmatprep.subr.bf16.mxu0 %v1431_v27  ;;  %v494_v38 = vld [vmem:[#allocation2 + $0xa0] sm:$0xff]  ;;  %v495_v3 = vld [vmem:[#allocation2 + $0xa8] sm:$0xff]  ;;  %v1451_v26 = vcombine.high %v532_v23, %v536_v24  ;;  %v537_v27 = vld [vmem:[#allocation2 + $0x1f8] sm:$0xff]  ;;  %v1429_v63 = vcombine.high %v509_v58, %v513_v59  ;;  %p1599_p3 = pnand %p1598_p2, %p1592_p13 }
  0x35   : > { %943 = vmatprep.subr.bf16.mxu1 %v1449_v22  ;;  %v1407_v39 = vcombine.high %v490_v37, %v494_v38  ;;  %v1406_v40 = vcombine.low %v490_v37, %v494_v38  ;;  %v1382_v41 = vld [vmem:[%s1883_s2] ss:$0 sm:$0xff]  ;;  %v1409_v5 = vcombine.high %v491_v2, %v495_v3  ;;  %v1408_v6 = vcombine.low %v491_v2, %v495_v3  ;;  %v483_v9 = vld [vmem:[#allocation2 + $0x48] sm:$0xff]  ;;  %v524_v38 = vld [vmem:[#allocation2 + $0x190] sm:$0xff] }
  0x36   : > { %v482_v7 = vld [vmem:[#allocation2 + $0x40] sm:$0xff]  ;;  %v487_v11 = vld [vmem:[#allocation2 + $0x68] sm:$0xff]  ;;  %v1452_v29 = vcombine.low %v533_v25, %v537_v27  ;;  %v1453_v30 = vcombine.high %v533_v25, %v537_v27  ;;  %v501_v2 = vld [vmem:[#allocation2 + $0xd8] sm:$0xff] }
  0x37   : > { %905 = vmatpush1.bf16.msra.mxu0 %v1430_v28  ;;  %v486_v8 = vld [vmem:[#allocation2 + $0x60] sm:$0xff]  ;;  %v1400_v13 = vcombine.low %v483_v9, %v487_v11  ;;  %v1401_v14 = vcombine.high %v483_v9, %v487_v11  ;;  %v475_v17 = vld [vmem:[#allocation2 + $0x8] sm:$0xff]  ;;  %v1450_v28 = vcombine.low %v532_v23, %v536_v24  ;;  %v505_v3 = vld [vmem:[#allocation2 + $0xf8] sm:$0xff] }
  0x38   : > { %906 = vmatprep.subr.bf16.mxu0 %v1423_v31  ;;  %v1399_v10 = vcombine.high %v482_v7, %v486_v8  ;;  %v1398_v12 = vcombine.low %v482_v7, %v486_v8  ;;  %v474_v15 = vld [vmem:[#allocation2] sm:$0xff]  ;;  %v479_v19 = vld [vmem:[#allocation2 + $0x28] sm:$0xff]  ;;  %v1677_v31 = vmov 0   ;;  %v1421_v7 = vcombine.high %v501_v2, %v505_v3  ;;  %v492_v8 = vld [vmem:[#allocation2 + $0x90] sm:$0xff] }
  0x39   : > { %v478_v16 = vld [vmem:[#allocation2 + $0x20] sm:$0xff]  ;;  %v1393_v22 = vcombine.high %v475_v17, %v479_v19  ;;  %932 = vmatprep.mubr.bf16.mxu0 %v1677_v31  ;;  %v496_v9 = vld [vmem:[#allocation2 + $0xb0] sm:$0xff]  ;;  %v497_v11 = vld [vmem:[#allocation2 + $0xb8] sm:$0xff] }
  0x3a   : > { %v1391_v18 = vcombine.high %v474_v15, %v478_v16  ;;  %v1390_v20 = vcombine.low %v474_v15, %v478_v16  ;;  %v484_v16 = vld [vmem:[#allocation2 + $0x50] sm:$0xff]  ;;  %v481_v27 = vld [vmem:[#allocation2 + $0x38] sm:$0xff] }
  0x3b   : > { %907 = vmatpush1.bf16.msra.mxu0 %v1422_v32  ;;  %v1384_v32 = vld [vmem:[%s1885_s4] ss:$0 sm:$0xff]  ;;  %v476_v24 = vld [vmem:[#allocation2 + $0x10] sm:$0xff] }
  0x3c   : > { %908 = vmatprep.subr.bf16.mxu0 %v1415_v35  ;;  %v480_v25 = vld [vmem:[#allocation2 + $0x30] sm:$0xff] }
  0x3f   : > { %909 = vmatpush1.bf16.msra.mxu0 %v1414_v36 }
  0x40   : > { %910 = vmatprep.subr.bf16.mxu0 %v1407_v39 }
  0x43   : > { %911 = vmatpush1.bf16.msra.mxu0 %v1406_v40  ;;  %v528_v40 = vld [vmem:[#allocation2 + $0x1b0] sm:$0xff] }
  0x44   : > { %912 = vmatprep.subr.bf16.mxu0 %v1399_v10  ;;  %v493_v10 = vld [vmem:[#allocation2 + $0x98] sm:$0xff] }
  0x45   : > { %v1413_v15 = vcombine.high %v493_v10, %v497_v11 }
  0x47   : > { %913 = vmatpush1.bf16.msra.mxu0 %v1398_v12 }
  0x48   : > { %914 = vmatprep.subr.bf16.mxu0 %v1391_v18  ;;  %v485_v18 = vld [vmem:[#allocation2 + $0x58] sm:$0xff] }
  0x4b   : > { %915 = vmatpush1.bf16.msra.mxu0 %v1390_v20  ;;  %v1410_v20 = vcombine.low %v492_v8, %v496_v9 }
  0x4c   : > { %986 = vmatprep.subr.bf16.mxu0 %v1451_v26  ;;  %v477_v26 = vld [vmem:[#allocation2 + $0x18] sm:$0xff] }
  0xee   : > { %v377_v42 = vpop.f32.mrf.mxu0 }
  0xef   : > { %v378_v44 = vadd.f32 %v1382_v41, %v377_v42  ;;  %v529_v42 = vld [vmem:[#allocation2 + $0x1b8] sm:$0xff] }
  0xf0   : > { %v1472_v43 = vpop.f32.mrf.mxu0 }
  0xf1   : > { %v384_v50 = vmax.f32 %v378_v44, 0.0 }
  0xf2   : > { %v380_v45 = vpop.f32.mrf.mxu0 }
  0xf3   : > { %v381_v46 = vadd.f32 %v1382_v41, %v380_v45  ;;  %v525_v41 = vld [vmem:[#allocation2 + $0x198] sm:$0xff] }
  0xf4   : > { %v1473_v47 = vpop.f32.mrf.mxu0 }
  0xf5   : > { %v385_v51 = vmax.f32 %v381_v46, 0.0  ;;  %v1443_v46 = vcombine.high %v524_v38, %v528_v40  ;;  %v1445_v47 = vcombine.high %v525_v41, %v529_v42 }
  0xf7   : > { %v386_v52 = vpack.c.bf16 %v385_v51, %v384_v50  ;;  %v517_v50 = vld [vmem:[#allocation2 + $0x158] sm:$0xff] }
  0xf8   : > { %v521_v51 = vld [vmem:[#allocation2 + $0x178] sm:$0xff] }
  0xf9   : > { %1483 = vmatmul.mubr.msk.bf16.vlgmr.msra.gmra.mxu1 %vm426_vm4, %v386_v52  ;;  %v1442_v52 = vcombine.low %v524_v38, %v528_v40  ;;  %v1437_v55 = vcombine.high %v517_v50, %v521_v51 }
  0xfa   : > { %944 = vmatpush1.bf16.msra.mxu1 %v1448_v21  ;;  %v1392_v21 = vcombine.low %v475_v17, %v479_v19  ;;  %975 = vmatprep.mubr.bf16.mxu1 %v1677_v31  ;;  %v488_v17 = vld [vmem:[#allocation2 + $0x70] sm:$0xff]  ;;  %v489_v19 = vld [vmem:[#allocation2 + $0x78] sm:$0xff] }
  0xfb   : > { %945 = vmatprep.subr.bf16.mxu1 %v1441_v53  ;;  %v1444_v53 = vcombine.low %v525_v41, %v529_v42  ;;  %v1405_v23 = vcombine.high %v485_v18, %v489_v19 }
  0xfe   : > { %946 = vmatpush1.bf16.msra.mxu1 %v1440_v56  ;;  %v508_v56 = vld [vmem:[#allocation2 + $0x110] sm:$0xff] }
  0xff   : > { %947 = vmatprep.subr.bf16.mxu1 %v1433_v57  ;;  %v512_v57 = vld [vmem:[#allocation2 + $0x130] sm:$0xff] }
 0x100   : > { %v1427_v62 = vcombine.high %v508_v56, %v512_v57 }
 0x102   : > { %948 = vmatpush1.bf16.msra.mxu1 %v1432_v60  ;;  %v1434_v60 = vcombine.low %v516_v48, %v520_v49 }
 0x103   : > { %949 = vmatprep.subr.bf16.mxu1 %v1425_v61  ;;  %v1436_v61 = vcombine.low %v517_v50, %v521_v51 }
 0x106   : > { %950 = vmatpush1.bf16.msra.mxu1 %v1424_v0  ;;  %v500_v0 = vld [vmem:[#allocation2 + $0xd0] sm:$0xff] }
 0x107   : > { %951 = vmatprep.subr.bf16.mxu1 %v1417_v1  ;;  %v504_v1 = vld [vmem:[#allocation2 + $0xf0] sm:$0xff] }
 0x108   : > { %v1418_v12 = vcombine.low %v500_v0, %v504_v1 }
 0x10a   : > { %952 = vmatpush1.bf16.msra.mxu1 %v1416_v4  ;;  %v1426_v4 = vcombine.low %v508_v56, %v512_v57 }
 0x10b   : > { %953 = vmatprep.subr.bf16.mxu1 %v1409_v5  ;;  %v1428_v5 = vcombine.low %v509_v58, %v513_v59 }
 0x10e   : > { %954 = vmatpush1.bf16.msra.mxu1 %v1408_v6  ;;  %v1419_v6 = vcombine.high %v500_v0, %v504_v1 }
 0x10f   : > { %955 = vmatprep.subr.bf16.mxu1 %v1401_v14  ;;  %v1411_v14 = vcombine.high %v492_v8, %v496_v9 }
 0x112   : > { %956 = vmatpush1.bf16.msra.mxu1 %v1400_v13  ;;  %v1420_v13 = vcombine.low %v501_v2, %v505_v3 }
 0x113   : > { %957 = vmatprep.subr.bf16.mxu1 %v1393_v22  ;;  %v1403_v22 = vcombine.high %v484_v16, %v488_v17 }
 0x116   : > { %958 = vmatpush1.bf16.msra.mxu1 %v1392_v21  ;;  %v1412_v21 = vcombine.low %v493_v10, %v497_v11 }
 0x117   : > { %1029 = vmatprep.subr.bf16.mxu1 %v1453_v30  ;;  %v1395_v30 = vcombine.high %v476_v24, %v480_v25 }
 0x1b9   : > { %v464_v33 = vpop.f32.mrf.mxu1 }
 0x1ba   : > { %v465_v35 = vadd.f32 %v1384_v32, %v464_v33  ;;  %v1396_v33 = vcombine.low %v477_v26, %v481_v27 }
 0x1bb   : > { %v1484_v34 = vpop.f32.mrf.mxu1 }
 0x1bc   : > { %v471_v43 = vmax.f32 %v465_v35, 0.0 }
 0x1bd   : > { %v467_v36 = vpop.f32.mrf.mxu1 }
 0x1be   : > { %v468_v37 = vadd.f32 %v1384_v32, %v467_v36  ;;  %v1394_v32 = vcombine.low %v476_v24, %v480_v25  ;;  %v540_v36 = vlaneseq }
 0x1bf   : > { %v1485_v39 = vpop.f32.mrf.mxu1 }
 0x1c0   : > { %v472_v44 = vmax.f32 %v468_v37, 0.0  ;;  %v1828_v39 = vshrl.u32 %v540_v36, 7 }
 0x1c2   : > { %v1822_v45 = vpack.c.bf16 %v472_v44, %v471_v43  ;;  %v546_v42 = vsub.s32 1, %v1828_v39  ;;  %v554_v43 = vsub.s32 3, %v1828_v39  ;;  %v542_v44 = vsub.s32 0, %v1828_v39 }
 0x1c3   : > { %v558_v11 = vsub.s32 4, %v1828_v39 }
 0x1c4   : > { %933 = vmatmul.mubr.bf16.vlgmr.msra.gmra.mxu0 %v1822_v45  ;;  %976 = vmatmul.mubr.bf16.vlgmr.msra.gmra.mxu1 %v1822_v45 }
 0x1c5   : > { %987 = vmatpush1.bf16.msra.mxu0 %v1450_v28  ;;  %1030 = vmatpush1.bf16.msra.mxu1 %v1452_v29  ;;  %v1402_v28 = vcombine.low %v484_v16, %v488_v17  ;;  %v1404_v29 = vcombine.low %v485_v18, %v489_v19  ;;  %v570_v16 = vsub.s32 7, %v1828_v39 }
 0x1c6   : > { %988 = vmatprep.subr.bf16.mxu0 %v1443_v46  ;;  %1031 = vmatprep.subr.bf16.mxu1 %v1445_v47  ;;  %v550_v46 = vsub.s32 2, %v1828_v39 }
 0x1c7   : > { %1018 = vmatprep.mubr.bf16.mxu0 %v1677_v31  ;;  %1061 = vmatprep.mubr.bf16.mxu1 %v1677_v31  ;;  %v1397_v31 = vcombine.high %v477_v26, %v481_v27 }
 0x1c9   : > { %989 = vmatpush1.bf16.msra.mxu0 %v1442_v52  ;;  %1032 = vmatpush1.bf16.msra.mxu1 %v1444_v53 }
 0x1ca   : > { %990 = vmatprep.subr.bf16.mxu0 %v1435_v54  ;;  %1033 = vmatprep.subr.bf16.mxu1 %v1437_v55 }
 0x1cd   : > { %991 = vmatpush1.bf16.msra.mxu0 %v1434_v60  ;;  %1034 = vmatpush1.bf16.msra.mxu1 %v1436_v61 }
 0x1ce   : > { %992 = vmatprep.subr.bf16.mxu0 %v1427_v62  ;;  %1035 = vmatprep.subr.bf16.mxu1 %v1429_v63 }
 0x1d1   : > { %993 = vmatpush1.bf16.msra.mxu0 %v1426_v4  ;;  %1036 = vmatpush1.bf16.msra.mxu1 %v1428_v5 }
 0x1d2   : > { %994 = vmatprep.subr.bf16.mxu0 %v1419_v6  ;;  %1037 = vmatprep.subr.bf16.mxu1 %v1421_v7 }
 0x1d5   : > { %995 = vmatpush1.bf16.msra.mxu0 %v1418_v12  ;;  %1038 = vmatpush1.bf16.msra.mxu1 %v1420_v13  ;;  %v566_v12 = vsub.s32 6, %v1828_v39 }
 0x1d6   : > { %996 = vmatprep.subr.bf16.mxu0 %v1411_v14  ;;  %1039 = vmatprep.subr.bf16.mxu1 %v1413_v15  ;;  %v562_v15 = vsub.s32 5, %v1828_v39 }
 0x1d9   : > { %997 = vmatpush1.bf16.msra.mxu0 %v1410_v20  ;;  %1040 = vmatpush1.bf16.msra.mxu1 %v1412_v21 }
 0x1da   : > { %998 = vmatprep.subr.bf16.mxu0 %v1403_v22  ;;  %1041 = vmatprep.subr.bf16.mxu1 %v1405_v23 }
 0x1dd   : > { %999 = vmatpush1.bf16.msra.mxu0 %v1402_v28  ;;  %1042 = vmatpush1.bf16.msra.mxu1 %v1404_v29 }
 0x1de   : > { %1000 = vmatprep.subr.bf16.mxu0 %v1395_v30  ;;  %1043 = vmatprep.subr.bf16.mxu1 %v1397_v31 }
 0x1e1   : > { %1001 = vmatpush1.bf16.msra.mxu0 %v1394_v32  ;;  %1044 = vmatpush1.bf16.msra.mxu1 %v1396_v33 }
 0x1e4   : > { %1019 = vmatmul.mubr.bf16.vlgmr.msra.gmra.mxu0 %v1822_v45  ;;  %1062 = vmatmul.mubr.bf16.vlgmr.msra.gmra.mxu1 %v1822_v45  ;;  %v538_v45 = vld [vmem:[%s1887_s6] sm:$0xff] }
 0x1e5   : > { %v547_v49 = vrot.slane %v538_v45, %v546_v42  ;;  %v555_v50 = vrot.slane %v538_v45, %v554_v43  ;;  %v543_v51 = vrot.slane %v538_v45, %v542_v44  ;;  %v551_v52 = vrot.slane %v538_v45, %v550_v46 }
 0x1e6   : > { %v559_v19 = vrot.slane %v538_v45, %v558_v11  ;;  %v567_v20 = vrot.slane %v538_v45, %v566_v12  ;;  %v563_v25 = vrot.slane %v538_v45, %v562_v15  ;;  %v571_v26 = vrot.slane %v538_v45, %v570_v16 }
 0x284   : > { %v934_v34 = vpop.f32.mrf.mxu0  ;;  %v977_v35 = vpop.f32.mrf.mxu1 }
 0x285   : > { %v935_v59 = vadd.f32 %v934_v34, %v543_v51  ;;  %v978_v60 = vadd.f32 %v977_v35, %v551_v52 }
 0x286   : > { %v936_v37 = vpop.f32.mrf.mxu0  ;;  %v979_v38 = vpop.f32.mrf.mxu1 }
 0x287   : > { %v937_v55 = vadd.f32 %v936_v37, %v547_v49  ;;  %v980_v56 = vadd.f32 %v979_v38, %v555_v50  ;;  %v1072_v3 = vmax.f32 %v935_v59, 0.0  ;;  %v1074_v4 = vmax.f32 %v978_v60, 0.0 }
 0x288   : > { %v938_v40 = vpop.f32.mrf.mxu0  ;;  %v981_v41 = vpop.f32.mrf.mxu1 }
 0x289   : > { %v939_v57 = vadd.f32 %v938_v40, %v543_v51  ;;  %v982_v58 = vadd.f32 %v981_v41, %v551_v52  ;;  %v1073_v63 = vmax.f32 %v937_v55, 0.0  ;;  %v1075_v0 = vmax.f32 %v980_v56, 0.0 }
 0x28a   : > { %v940_v47 = vpop.f32.mrf.mxu0  ;;  %v983_v48 = vpop.f32.mrf.mxu1 }
 0x28b   : > { %v941_v53 = vadd.f32 %v940_v47, %v547_v49  ;;  %v984_v54 = vadd.f32 %v983_v48, %v555_v50  ;;  %v1080_v1 = vmax.f32 %v939_v57, 0.0  ;;  %v1082_v2 = vmax.f32 %v982_v58, 0.0 }
 0x28d   : > { %v1081_v61 = vmax.f32 %v941_v53, 0.0  ;;  %v1083_v62 = vmax.f32 %v984_v54, 0.0  ;;  %v1088_v7 = vmax.f32 %v1072_v3, %v1080_v1  ;;  %v1102_v8 = vmax.f32 %v1074_v4, %v1082_v2 }
 0x28f   : > { %v1095_v5 = vmax.f32 %v1073_v63, %v1081_v61  ;;  %v1109_v6 = vmax.f32 %v1075_v0, %v1083_v62  ;;  %v1089_v13 = vrot.slane %v1088_v7, 4  ;;  %v1103_v14 = vrot.slane %v1102_v8, 4 }
 0x290   : > { %v1678_v61 = vmov 1966171168  }
 0x291   : > { %v1096_v9 = vrot.slane %v1095_v5, 4  ;;  %v1110_v10 = vrot.slane %v1109_v6, 4  ;;  %v1090_v21 = vmax.f32 %v1088_v7, %v1089_v13  ;;  %v1104_v22 = vmax.f32 %v1102_v8, %v1103_v14 }
 0x292   : > { %v1161_v62 = vunpack.c.l.s4 %v1678_v61 }
 0x293   : > { %v1097_v17 = vmax.f32 %v1095_v5, %v1096_v9  ;;  %v1111_v18 = vmax.f32 %v1109_v6, %v1110_v10  ;;  %v1091_v33 = vrot.slane %v1090_v21, 2  ;;  %v1105_v34 = vrot.slane %v1104_v22, 2 }
 0x294   : > { %v1162_v11 = vunpack.c.0.s8 %v1161_v62 }
 0x295   : > { %v1098_v27 = vrot.slane %v1097_v17, 2  ;;  %v1112_v28 = vrot.slane %v1111_v18, 2  ;;  %v1092_v52 = vmax.f32 %v1090_v21, %v1091_v33  ;;  %v1106_v53 = vmax.f32 %v1104_v22, %v1105_v34 }
 0x297   : > { %v1099_v42 = vmax.f32 %v1097_v17, %v1098_v27  ;;  %v1113_v43 = vmax.f32 %v1111_v18, %v1112_v28  ;;  %v1093_v4 = vrot.slane %v1092_v52, 1  ;;  %v1107_v5 = vrot.slane %v1106_v53, 1 }
 0x299   : > { %v1100_v60 = vrot.slane %v1099_v42, 1  ;;  %v1114_v63 = vrot.slane %v1113_v43, 1  ;;  %v1094_v17 = vmax.f32 %v1092_v52, %v1093_v4  ;;  %v1108_v18 = vmax.f32 %v1106_v53, %v1107_v5 }
 0x29b   : > { %v1101_v10 = vmax.f32 %v1099_v42, %v1100_v60  ;;  %v1115_v12 = vmax.f32 %v1113_v43, %v1114_v63 }
 0x2a4   : > { %v1020_v23 = vpop.f32.mrf.mxu0  ;;  %v1063_v24 = vpop.f32.mrf.mxu1 }
 0x2a5   : > { %v1021_v29 = vadd.f32 %v1020_v23, %v559_v19  ;;  %v1064_v30 = vadd.f32 %v1063_v24, %v567_v20  ;;  %v1156_v23 = vcombine.low %v1094_v17, %v1101_v10  ;;  %v1165_v24 = vsub.s32 %v1162_v11, %v1828_v39 }
 0x2a6   : > { %v1022_v31 = vpop.f32.mrf.mxu0  ;;  %v1065_v32 = vpop.f32.mrf.mxu1 }
 0x2a7   : > { %v1023_v35 = vadd.f32 %v1022_v31, %v563_v25  ;;  %v1066_v36 = vadd.f32 %v1065_v32, %v571_v26  ;;  %v1076_v44 = vmax.f32 %v1021_v29, 0.0  ;;  %v1078_v46 = vmax.f32 %v1064_v30, 0.0 }
 0x2a8   : > { %v1024_v37 = vpop.f32.mrf.mxu0  ;;  %v1067_v38 = vpop.f32.mrf.mxu1  ;;  %v1166_v32 = vrot.slane %v1156_v23, %v1165_v24 }
 0x2a9   : > { %v1025_v40 = vadd.f32 %v1024_v37, %v559_v19  ;;  %v1068_v41 = vadd.f32 %v1067_v38, %v567_v20  ;;  %v1077_v54 = vmax.f32 %v1023_v35, 0.0  ;;  %v1079_v55 = vmax.f32 %v1066_v36, 0.0 }
 0x2aa   : > { %v1026_v47 = vpop.f32.mrf.mxu0  ;;  %v1069_v45 = vpop.f32.mrf.mxu1 }
 0x2ab   : > { %v1084_v48 = vmax.f32 %v1025_v40, 0.0  ;;  %v1086_v49 = vmax.f32 %v1068_v41, 0.0  ;;  %v1027_v50 = vadd.f32 %v1026_v47, %v563_v25  ;;  %v1070_v51 = vadd.f32 %v1069_v45, %v571_v26 }
 0x2ac   : > { %v1157_v25 = vcombine.low %v1108_v18, %v1115_v12 }
 0x2ad   : > { %v1116_v56 = vmax.f32 %v1076_v44, %v1084_v48  ;;  %v1130_v57 = vmax.f32 %v1078_v46, %v1086_v49  ;;  %v1085_v58 = vmax.f32 %v1027_v50, 0.0  ;;  %v1087_v59 = vmax.f32 %v1070_v51, 0.0 }
 0x2ae   : > { %v1173_v33 = vrot.slane %v1157_v25, %v1165_v24 }
 0x2af   : > { %v1117_v0 = vrot.slane %v1116_v56, 4  ;;  %v1131_v1 = vrot.slane %v1130_v57, 4  ;;  %v1123_v2 = vmax.f32 %v1077_v54, %v1085_v58  ;;  %v1137_v3 = vmax.f32 %v1079_v55, %v1087_v59 }
 0x2b0   : > { %v1188_v42 = vcombine.low %v1166_v32, %v1173_v33 }
 0x2b1   : > { %v1118_v6 = vmax.f32 %v1116_v56, %v1117_v0  ;;  %v1132_v7 = vmax.f32 %v1130_v57, %v1131_v1  ;;  %v1124_v8 = vrot.slane %v1123_v2, 4  ;;  %v1138_v9 = vrot.slane %v1137_v3, 4 }
 0x2b2   : > { %v1196_v44 = vrot.slane %v1188_v42, %v1165_v24 }
 0x2b3   : > { %v1119_v13 = vrot.slane %v1118_v6, 2  ;;  %v1133_v14 = vrot.slane %v1132_v7, 2  ;;  %v1125_v15 = vmax.f32 %v1123_v2, %v1124_v8  ;;  %v1139_v16 = vmax.f32 %v1137_v3, %v1138_v9 }
 0x2b5   : > { %v1120_v19 = vmax.f32 %v1118_v6, %v1119_v13  ;;  %v1134_v20 = vmax.f32 %v1132_v7, %v1133_v14  ;;  %v1126_v21 = vrot.slane %v1125_v15, 2  ;;  %v1140_v22 = vrot.slane %v1139_v16, 2 }
 0x2b7   : > { %v1121_v26 = vrot.slane %v1120_v19, 1  ;;  %v1135_v27 = vrot.slane %v1134_v20, 1  ;;  %v1127_v28 = vmax.f32 %v1125_v15, %v1126_v21  ;;  %v1141_v29 = vmax.f32 %v1139_v16, %v1140_v22 }
 0x2b9   : > { %v1128_v30 = vrot.slane %v1127_v28, 1  ;;  %v1142_v31 = vrot.slane %v1141_v29, 1  ;;  %v1122_v34 = vmax.f32 %v1120_v19, %v1121_v26  ;;  %v1136_v35 = vmax.f32 %v1134_v20, %v1135_v27 }
 0x2bb   : > { %v1129_v36 = vmax.f32 %v1127_v28, %v1128_v30  ;;  %v1143_v37 = vmax.f32 %v1141_v29, %v1142_v31 }
 0x2bd   : > { %v1158_v38 = vcombine.low %v1122_v34, %v1129_v36  ;;  %v1159_v40 = vcombine.low %v1136_v35, %v1143_v37 }
 0x2bf   : > { %v1180_v41 = vrot.slane %v1158_v38, %v1165_v24  ;;  %v1187_v39 = vrot.slane %v1159_v40, %v1165_v24 }
 0x2c1   : > { %v1189_v43 = vcombine.low %v1180_v41, %v1187_v39 }
 0x2c3   : > { %v1203_v46 = vrot.slane %v1189_v43, %v1165_v24 }
 0x2c5   : > { %v1204_v47 = vcombine.low %v1196_v44, %v1203_v46 }
 0x2c7   : > { %1206 = vst [vmem:[%s309_s22] sm:$0xff] %v1204_v47 }
 0x2c8   : > { %1602 = shalt.err (!%p1599_p3)
}
 0x2c9   : > { %s1603_s18 = scalar_lea.hbm %s1285_s10, 128  ;;  %s1607_s21 = scalar_lea.hbm %s1888_s7, 256 }
 0x2ca   : > { %p1604_p5 = scmp.ne.s32.totalorder %s1285_s10, %s1603_s18  ;;  %p1608_p9 = scmp.lt.s32.totalorder %s1285_s10, %s1888_s7 }
 0x2cb   : > { %p1609_p12 = scmp.lt.s32.totalorder %s1607_s21, %s1603_s18 }
 0x2cc   : > { %p1605_p6 = pnand %p1604_p5, %p1760_p4 }
 0x2cd   : > { %p1610_p10 = por %p1609_p12, %p1608_p9 }
 0x2ce   : > { %p1606_p7 = pneg %p1605_p6 }
 0x2d0   : > { %p1611_p11 = pnand %p1610_p10, %p1606_p7 }
 0x2d2   : > { %1614 = shalt.err (!%p1611_p11)
}
 0x2d3   : > { %1490 = dma.vmem_to_hbm [thread:$0]  (%p1760_p4), %s1288_s23, 128, %s1285_s10, %s1273_s12  }
 0x2d4 PF: > { %p1502_p13 = scmp.ge.s32.totalorder %s1669_s29, 2  ;;  %s1299_s8 = sand.u32 1, %s1649_s24  }
 0x2d5   : > { %s1300_s15 = scalar_lea.sflag [#allocation4], %s1299_s8 }
 0x2d6   : > { %p1497_p0 = pnand %p1502_p13, %p1767_p8 }
 0x2d8   : > { %p1498_p1 = pneg %p1497_p0 }
 0x2da   : > { %1644 = dma.done.wait (%p1498_p1), %s1300_s15, 128  }
 0x2db   : > { %1646 = vsyncadd (%p1498_p1), %s1300_s15, 4294967168  ;;  %s21_s29 = sadd.s32 1, %s1669_s29   ;;  %s1893_s24 = smov %s1653_s25 }
 0x2dc   : > { %p18_p2 = scmp.ge.s32.totalorder %s21_s29, 4   ;;  %s1894_s25 = smov %s1657_s26 }
 0x2dd   : > { %s1895_s26 = smov %s1773_s14  ;;  %s1896_s27 = smov %s1665_s28 }
 0x2de   : > { %s1897_s28 = smov %s1899_s9  ;;  %20 = sbr.rel (!%p18_p2) target bundleno = 5 (0x5), region = 96 }
 0x2e3   :  { %1305 = vsyncpa [#allocation3], 1 }
 0x2e4   :  { %1307 = vsyncpa [#allocation3 + $0x1], 1 }
 0x2e5   :  { %1308 = vsyncpa [#allocation4], 1 }
 0x2e6   :  { %1310 = vsyncpa [#allocation4 + $0x1], 1 }

</bundles_post_ra>
